<compile_context>
chip_gen: v5e
topology: v5e:2x2
jax: 0.10.0
libtpu: 0.0.40
codegen_flags: <defaults>
</compile_context>

<pallas_src>
import functools

import jax
import jax.numpy as jnp
from jax.experimental import pallas as pl
from jax.experimental.pallas import tpu as pltpu


def _bce_with_logits_kernel(pred_ref, tgt_ref, out_ref, *,
                            pos_weight, total_n, block_rows, need_mask):
    x = pred_ref[...].astype(jnp.float32)
    y = tgt_ref[...].astype(jnp.float32)

    # PyTorch-stable BCEWithLogits with pos_weight:
    #   l_w  = 1 + (pos_weight - 1) * y
    #   loss = (1 - y) * x + l_w * (log1p(exp(-|x|)) + max(-x, 0))
    log_w = 1.0 + (pos_weight - 1.0) * y
    softplus_term = jnp.log1p(jnp.exp(-jnp.abs(x))) + jnp.maximum(-x, 0.0)
    loss = (1.0 - y) * x + log_w * softplus_term

    if need_mask:
        # Zero out the padded tail elements (only compiled in when padding exists).
        i = pl.program_id(0)
        row = jax.lax.broadcasted_iota(jnp.int32, loss.shape, 0)
        lane = jax.lax.broadcasted_iota(jnp.int32, loss.shape, 1)
        gidx = (i * block_rows + row) * 128 + lane
        loss = jnp.where(gidx < total_n, loss, 0.0)

    # Reduce (block_rows, 128) -> (8, 128) with pure vreg (VPU) adds; the tiny
    # cross-lane reduction happens once in the wrapper.
    out_ref[...] = loss.reshape(block_rows // 8, 8, 128).sum(axis=0)


def simple_loss(ypred, ytgt, pos_weight, block_rows=1024):
    """BCEWithLogitsLoss(pos_weight=pos_weight)(ypred, ytgt), mean reduction."""
    lane = 128
    n = ypred.size

    rows = pl.cdiv(n, lane)
    # block_rows: multiple of 8, capped to what the input actually needs.
    block_rows = max(8, min(int(block_rows), pl.cdiv(rows, 8) * 8))
    block_rows = (block_rows // 8) * 8
    rows_p = pl.cdiv(rows, block_rows) * block_rows
    pad = rows_p * lane - n
    num_tiles = rows_p // block_rows

    pred = jnp.ravel(ypred)
    tgt = jnp.ravel(ytgt)
    if pad:
        pred = jnp.pad(pred, (0, pad))
        tgt = jnp.pad(tgt, (0, pad))
    pred = pred.reshape(rows_p, lane)
    tgt = tgt.reshape(rows_p, lane)

    kernel = functools.partial(
        _bce_with_logits_kernel,
        pos_weight=float(pos_weight),
        total_n=int(n),
        block_rows=block_rows,
        need_mask=(pad != 0),
    )

    partials = pl.pallas_call(
        kernel,
        out_shape=jax.ShapeDtypeStruct((num_tiles * 8, lane), jnp.float32),
        grid=(num_tiles,),
        in_specs=[
            pl.BlockSpec((block_rows, lane), lambda i: (i, 0)),
            pl.BlockSpec((block_rows, lane), lambda i: (i, 0)),
        ],
        out_specs=pl.BlockSpec((8, lane), lambda i: (i, 0)),
        compiler_params=pltpu.CompilerParams(
            dimension_semantics=("parallel",),
            vmem_limit_bytes=64 << 20,
        ),
    )(pred, tgt)

    return jnp.sum(partials) / n


def _reference_loss(ypred, ytgt, pos_weight):
    x = ypred.astype(jnp.float32)
    y = ytgt.astype(jnp.float32)
    log_w = 1.0 + (pos_weight - 1.0) * y
    loss = (1.0 - y) * x + log_w * (jnp.log1p(jnp.exp(-jnp.abs(x)))
                                    + jnp.maximum(-x, 0.0))
    return jnp.mean(loss)


if __name__ == "__main__":
    key = jax.random.PRNGKey(0)
    k1, k2, k3, k4 = jax.random.split(key, 4)

    pos_weight = 2.0  # BCEWithLogitsLoss pos_weight (deterministic module parameter)

    # NCHW-shaped logits and binary targets (exact multiple of 128 -> no padding path)
    ypred = jax.random.normal(k1, (2, 4, 16, 16), dtype=jnp.float32)
    ytgt = jax.random.bernoulli(k2, p=0.3, shape=(2, 4, 16, 16)).astype(jnp.float32)
    loss = jax.block_until_ready(simple_loss(ypred, ytgt, pos_weight))
    ref = _reference_loss(ypred, ytgt, pos_weight)
    assert jnp.allclose(loss, ref, rtol=1e-5, atol=1e-5), (loss, ref)

    # Ragged size -> exercises the in-kernel iota tail mask path.
    ypred2 = jax.random.normal(k3, (3, 5, 7, 9), dtype=jnp.float32)
    ytgt2 = jax.random.bernoulli(k4, p=0.4, shape=(3, 5, 7, 9)).astype(jnp.float32)
    loss2 = jax.block_until_ready(simple_loss(ypred2, ytgt2, pos_weight))
    ref2 = _reference_loss(ypred2, ytgt2, pos_weight)
    assert jnp.allclose(loss2, ref2, rtol=1e-5, atol=1e-5), (loss2, ref2)

    print("KERNEL_OK")
</pallas_src>

<mosaic_0001>
module attributes {stable_mosaic.version = 11 : i64} {
  func.func @_bce_with_logits_kernel(%arg0: i32, %arg1: memref<16x128xf32, #tpu.memory_space<vmem>>, %arg2: memref<16x128xf32, #tpu.memory_space<vmem>>, %arg3: memref<8x128xf32, #tpu.memory_space<vmem>>) attributes {dimension_semantics = [#tpu.dimension_semantics<parallel>], iteration_bounds = array<i64: 1>, scalar_prefetch = 0 : i64, scratch_operands = 0 : i64, tpu.core_type = #tpu.core_type<tc>, window_params = [{transform_indices = @transform_0, window_bounds = array<i64: 16, 128>}, {transform_indices = @transform_1, window_bounds = array<i64: 16, 128>}, {transform_indices = @transform_2, window_bounds = array<i64: 8, 128>}]} {
    %c0 = arith.constant 0 : index
    %c0_0 = arith.constant 0 : index
    %0 = vector.load %arg1[%c0, %c0_0] : memref<16x128xf32, #tpu.memory_space<vmem>>, vector<16x128xf32>
    %c0_1 = arith.constant 0 : index
    %c0_2 = arith.constant 0 : index
    %1 = vector.load %arg2[%c0_1, %c0_2] : memref<16x128xf32, #tpu.memory_space<vmem>>, vector<16x128xf32>
    %cst = arith.constant 1.000000e+00 : f32
    %2 = vector.broadcast %cst : f32 to vector<16x128xf32>
    %3 = arith.mulf %2, %1 : vector<16x128xf32>
    %cst_3 = arith.constant 1.000000e+00 : f32
    %4 = vector.broadcast %cst_3 : f32 to vector<16x128xf32>
    %5 = arith.addf %4, %3 : vector<16x128xf32>
    %6 = math.absf %0 : vector<16x128xf32>
    %cst_4 = arith.constant 0.000000e+00 : f32
    %7 = vector.broadcast %cst_4 : f32 to vector<16x128xf32>
    %8 = arith.subf %7, %6 : vector<16x128xf32>
    %9 = math.exp %8 : vector<16x128xf32>
    %10 = math.log1p %9 : vector<16x128xf32>
    %cst_5 = arith.constant 0.000000e+00 : f32
    %11 = vector.broadcast %cst_5 : f32 to vector<16x128xf32>
    %12 = arith.subf %11, %0 : vector<16x128xf32>
    %cst_6 = arith.constant 0.000000e+00 : f32
    %13 = vector.broadcast %cst_6 : f32 to vector<16x128xf32>
    %14 = arith.maximumf %12, %13 : vector<16x128xf32>
    %15 = arith.addf %10, %14 : vector<16x128xf32>
    %cst_7 = arith.constant 1.000000e+00 : f32
    %16 = vector.broadcast %cst_7 : f32 to vector<16x128xf32>
    %17 = arith.subf %16, %1 : vector<16x128xf32>
    %18 = arith.mulf %17, %0 : vector<16x128xf32>
    %19 = arith.mulf %5, %15 : vector<16x128xf32>
    %20 = arith.addf %18, %19 : vector<16x128xf32>
    %21 = vector.shape_cast %20 : vector<16x128xf32> to vector<2x8x128xf32>
    %cst_8 = arith.constant dense<0.000000e+00> : vector<8x128xf32>
    %22 = vector.multi_reduction <add>, %21, %cst_8 [0] : vector<2x8x128xf32> to vector<8x128xf32>
    %c0_9 = arith.constant 0 : index
    %c0_10 = arith.constant 0 : index
    %23 = vector.load %arg3[%c0_9, %c0_10] : memref<8x128xf32, #tpu.memory_space<vmem>>, vector<8x128xf32>
    tpu.vector_store %arg3[%c0_9, %c0_10], %22 {strides = array<i32>} : memref<8x128xf32, #tpu.memory_space<vmem>>, vector<8x128xf32>,
    return
  }
  func.func @transform_0(%arg0: i32) -> (i32, i32) {
    %c0_i32 = arith.constant 0 : i32
    %c0_i32_0 = arith.constant 0 : i32
    return %arg0, %c0_i32 : i32, i32
  }
  func.func @transform_1(%arg0: i32) -> (i32, i32) {
    %c0_i32 = arith.constant 0 : i32
    %c0_i32_0 = arith.constant 0 : i32
    return %arg0, %c0_i32 : i32, i32
  }
  func.func @transform_2(%arg0: i32) -> (i32, i32) {
    %c0_i32 = arith.constant 0 : i32
    %c0_i32_0 = arith.constant 0 : i32
    return %arg0, %c0_i32 : i32, i32
  }
}

</mosaic_0001>

<bundles_post_ra>
// kernel: tpu_custom_call.1
= control target key start
LH: loop header
LB: loop body
LE: loop exit
PB: predicated region body
PF: predicated region fallthrough
CT: control target
= control target key end

     0   :  { %7 = vsyncpa [#allocation3], 0  ;;  %s230_s0 = inlined_call_operand.hbm [shape: f32[16,128], index: 0, kind: input, shape index: {}]   ;;  %s231_s1 = inlined_call_operand.hbm [shape: f32[16,128], index: 1, kind: input, shape index: {}]   ;;  %s232_s2 = inlined_call_operand.hbm [shape: f32[8,128], index: 2, kind: output, shape index: {}]  }
   0x1   :  { %8 = vsyncpa [#allocation6], 0 }
   0x2   :  { %9 = vsyncpa [#allocation4], 0  ;;  %s14_s11 = sshll.u32 %s230_s0, 4  ;;  %s201_s12 = smov [#allocation2]   ;;  %s15_s11 = int_to_ptr.hbm [resolvable:$true] %s14_s11 }
   0x3   :  { %s16_s13 = sshll.u32 %s201_s12, 4  ;;  %s27_s16 = sshll.u32 %s231_s1, 4  ;;  %s17_s13 = int_to_ptr.vmem [resolvable:$true] %s16_s13  ;;  %s28_s16 = int_to_ptr.hbm [resolvable:$true] %s27_s16 }
   0x4   :  { %s202_s17 = smov 128   ;;  %s203_s18 = smov 8  }
   0x5   :  { %22 = dma.hbm_to_vmem [thread:$0]  %s15_s11, 256, %s17_s13, [#allocation3], %s202_s17, %s202_s17, %s203_s18  }
   0x6   :  { %s204_s19 = smov [#allocation5]  }
   0x7   :  { %s29_s20 = sshll.u32 %s204_s19, 4  ;;  %s30_s20 = int_to_ptr.vmem [resolvable:$true] %s29_s20 }
   0x8   :  { %35 = dma.hbm_to_vmem [thread:$0]  %s28_s16, 256, %s30_s20, [#allocation6], %s202_s17, %s202_s17, %s203_s18  }
   0x9   :  { %195 = dma.done.wait [#allocation3], 256  }
   0xa   :  { %196 = vsyncadd [#allocation3], 4294967040 }
   0xb   :  { %197 = dma.done.wait [#allocation6], 256  }
   0xc   :  { %198 = vsyncadd [#allocation6], 4294967040  ;;  %v44_v0 = vld [vmem:[#allocation2] sm:$0xff]  ;;  %v45_v1 = vld [vmem:[#allocation2 + $0x8] sm:$0xff]  ;;  %s205_s0 = smov [#allocation7]   ;;  %s99_s23 = sshll.u32 %s232_s2, 4  ;;  %s100_s23 = int_to_ptr.hbm [resolvable:$true] %s99_s23 }
   0xd   :  { %v50_v2 = vand.u32 2147483647, %v44_v0  ;;  %v51_v3 = vand.u32 2147483647, %v45_v1  ;;  %v76_v17 = vsub.f32 0.0, %v44_v0  ;;  %v46_v18 = vld [vmem:[#allocation5] sm:$0xff] }
   0xe   :  { %v77_v20 = vsub.f32 0.0, %v45_v1  ;;  %v47_v21 = vld [vmem:[#allocation5 + $0x8] sm:$0xff]  ;;  %v82_v26 = vsub.f32 1.0, %v46_v18  ;;  %v48_v31 = vadd.f32 1.0, %v46_v18  ;;  %s97_s1 = sshll.u32 %s205_s0, 4  ;;  %s98_s1 = int_to_ptr.vmem [resolvable:$true] %s97_s1 }
   0xf   :  { %v52_v4 = vsub.f32 0.0, %v50_v2  ;;  %v53_v5 = vsub.f32 0.0, %v51_v3  ;;  %v78_v25 = vmax.f32 %v76_v17, 0.0  ;;  %v83_v30 = vsub.f32 1.0, %v47_v21 }
  0x10   :  { %v79_v29 = vmax.f32 %v77_v20, 0.0  ;;  %v49_v33 = vadd.f32 1.0, %v47_v21  ;;  %v84_v37 = vmul.f32 %v82_v26, %v44_v0 }
  0x11   :  { %v54_v6 = vmul.f32 1.442695, %v52_v4  ;;  %v56_v7 = vmul.f32 1.442695, %v53_v5  ;;  %v85_v39 = vmul.f32 %v83_v30, %v45_v1 }
  0x13   :  { %115 = vpow2.f32 %v54_v6 }
  0x14   :  { %117 = vpow2.f32 %v56_v7 }
  0x19   :  { %v116_v8 = vpop.eup %115 }
  0x1a   :  { %v118_v9 = vpop.eup %117  ;;  %v58_v10 = vadd.f32 1.0, %v116_v8  ;;  %v61_v11 = vmul.f32 -0.5, %v116_v8  ;;  %v64_v15 = vand.u32 2147483647, %v116_v8 }
  0x1b   :  { %v67_v12 = vadd.f32 1.0, %v118_v9  ;;  %v70_v13 = vmul.f32 -0.5, %v118_v9  ;;  %v73_v19 = vand.u32 2147483647, %v118_v9 }
  0x1c   :  { %119 = vlog2.f32 %v58_v10  ;;  %v62_v14 = vadd.f32 1.0, %v61_v11  ;;  %vm65_vm0 = vcmp.lt.f32.partialorder %v64_v15, 0.0004427343 }
  0x1d   :  { %121 = vlog2.f32 %v67_v12  ;;  %v71_v16 = vadd.f32 1.0, %v70_v13  ;;  %vm74_vm1 = vcmp.lt.f32.partialorder %v73_v19, 0.0004427343 }
  0x1e   :  { %v63_v22 = vmul.f32 %v116_v8, %v62_v14 }
  0x1f   :  { %v72_v24 = vmul.f32 %v118_v9, %v71_v16 }
  0x22   :  { %v120_v23 = vpop.eup %119 }
  0x23   :  { %v122_v27 = vpop.eup %121  ;;  %v60_v28 = vmul.f32 0.6931472, %v120_v23 }
  0x24   :  { %v69_v32 = vmul.f32 0.6931472, %v122_v27 }
  0x25   :  { %v66_v34 = vsel %vm65_vm0, %v63_v22, %v60_v28 }
  0x26   :  { %v75_v35 = vsel %vm74_vm1, %v72_v24, %v69_v32  ;;  %v80_v36 = vadd.f32 %v78_v25, %v66_v34 }
  0x27   :  { %v81_v38 = vadd.f32 %v79_v29, %v75_v35 }
  0x28   :  { %v86_v40 = vmul.f32 %v80_v36, %v48_v31 }
  0x29   :  { %v87_v41 = vmul.f32 %v81_v38, %v49_v33 }
  0x2a   :  { %v88_v42 = vadd.f32 %v86_v40, %v84_v37 }
  0x2b   :  { %v89_v43 = vadd.f32 %v87_v41, %v85_v39 }
  0x2d   :  { %v90_v44 = vadd.f32 %v89_v43, %v88_v42 }
  0x2f   :  { %91 = vst [vmem:[#allocation7] sm:$0xff] %v90_v44 }
  0x30   :  { %102 = dma.vmem_to_hbm [thread:$0]  %s98_s1, 128, %s100_s23, [#allocation4]  }
  0x31   :  { %199 = dma.done.wait [#allocation4], 128  }
  0x32   :  { %200 = vsyncadd [#allocation4], 4294967168 }
  0x33   :  { %107 = vsyncpa [#allocation3], 1 }
  0x34   :  { %108 = vsyncpa [#allocation6], 1 }
  0x35   :  { %109 = vsyncpa [#allocation4], 1 }

</bundles_post_ra>
